<compile_context>
chip_gen: v5e
topology: v5e:2x2
jax: 0.10.0
libtpu: 0.0.40
codegen_flags: <defaults>
</compile_context>

<pallas_src>
import functools

import jax
import jax.numpy as jnp
from jax import lax
from jax.experimental import pallas as pl
from jax.experimental.pallas import tpu as pltpu

# LIF / LI parameters (norse defaults, LIFParameters(method='super', alpha=100))
DT = 0.001
TAU_SYN_INV = 200.0
TAU_MEM_INV = 100.0
V_TH = 1.0
V_LEAK = 0.0


def _round_up(x, m):
    return (x + m - 1) // m * m


def dendseq_kernel(x_ref, wh_ref, bh_ref, wo_ref, bo_ref,      # inputs
                   volt_ref, spk_ref,                           # outputs
                   vh, ih, vo, io, zbuf,                        # scratch
                   *, tile_t, batch, b_pad):
    c = pl.program_id(0)

    # ---- init recurrent state + spike accumulator on the first chunk ----
    @pl.when(c == 0)
    def _():
        vh[...] = jnp.zeros_like(vh)
        ih[...] = jnp.zeros_like(ih)
        vo[...] = jnp.zeros_like(vo)
        io[...] = jnp.zeros_like(io)
        spk_ref[...] = jnp.zeros_like(spk_ref)

    x_chunk = x_ref[...]                                   # (tile_t*b_pad, F2) f32

    # ---- hoisted, state-independent hidden input currents: one MXU pass ----
    cur_h = jnp.dot(x_chunk.astype(jnp.bfloat16), wh_ref[...],
                    preferred_element_type=jnp.float32) + bh_ref[...]
    if batch != b_pad:
        # zero the currents of padded batch rows so they never spike / pollute
        # the spike-activity count (their input rows are already zero).
        row = lax.broadcasted_iota(jnp.int32, (tile_t * b_pad, 1), 0)
        cur_h = cur_h * ((row % b_pad) < batch).astype(jnp.float32)

    # ---- hidden dendritic LIF recurrence (elementwise, statically unrolled) --
    v_h = vh[...]
    i_h = ih[...]
    for k in range(tile_t):
        v_dec = v_h + DT * TAU_MEM_INV * ((V_LEAK - v_h) + i_h)   # uses OLD i
        i_dec = (1.0 - DT * TAU_SYN_INV) * i_h
        z = (v_dec > V_TH).astype(jnp.float32)                    # heaviside spikes
        v_h = v_dec * (1.0 - z)                                   # hard reset to 0
        i_h = i_dec + cur_h[k * b_pad:(k + 1) * b_pad, :]         # add input AFTER
        zbuf[k * b_pad:(k + 1) * b_pad, :] = z                    # aligned (8,128) store
    vh[...] = v_h
    ih[...] = i_h

    z_chunk = zbuf[...]                                    # (tile_t*b_pad, h_pad)

    # ---- hoisted readout input currents: one MXU pass, lane-dense N=128 ----
    cur_o = jnp.dot(z_chunk.astype(jnp.bfloat16), wo_ref[...],
                    preferred_element_type=jnp.float32) + bo_ref[...]

    # ---- output dendritic LI (leaky-integrator, non-spiking) recurrence ----
    v_o = vo[...]
    i_o = io[...]
    for k in range(tile_t):
        v_o = v_o + DT * TAU_MEM_INV * ((V_LEAK - v_o) + i_o)     # uses OLD i
        i_o = (1.0 - DT * TAU_SYN_INV) * i_o + cur_o[k * b_pad:(k + 1) * b_pad, :]
        volt_ref[k * b_pad:(k + 1) * b_pad, :] = v_o              # full (8,128) tiles
    vo[...] = v_o
    io[...] = i_o

    # ---- spike activity: two chunk-level reductions, not per-timestep ----
    spk_ref[...] = spk_ref[...] + (jnp.sum(x_chunk) + jnp.sum(z_chunk))


@functools.partial(jax.jit, static_argnames=("tile_t",))
def dend_seq_net3(x, wh, bh, wo, bo, tile_t=4):
    """x: [T, B, H, W] (or [T, B, F2]) float32.
    wh: (F2, h1), bh: (1, h1), wo: (h1, 10), bo: (1, 10) float32.
    Returns (voltages [T, B, 10] float32, spk_act scalar float32)."""
    if x.ndim == 4:
        x = x.reshape(x.shape[0], x.shape[1], -1)
    seq, batch, f2 = x.shape
    h1 = wh.shape[1]
    n_out = wo.shape[1]
    assert seq % tile_t == 0, "seq_length must be a multiple of tile_t"

    b_pad = _round_up(batch, 8)      # sublane-align the batch dimension
    h_pad = _round_up(h1, 128)       # lane-dense hidden width
    n_pad = _round_up(n_out, 128)    # lane-dense readout width
    n_chunks = seq // tile_t

    # Zero-padded / fused / bf16 parameter layouts.  Padded hidden units get
    # zero weight and zero bias, so they never spike and are inert.
    wh_p = jnp.zeros((f2, h_pad), jnp.float32).at[:, :h1].set(wh).astype(jnp.bfloat16)
    bh_p = jnp.zeros((1, h_pad), jnp.float32).at[:, :h1].set(bh)
    wo_p = jnp.zeros((h_pad, n_pad), jnp.float32).at[:h1, :n_out].set(wo).astype(jnp.bfloat16)
    bo_p = jnp.zeros((1, n_pad), jnp.float32).at[:, :n_out].set(bo)

    # Batch-pad (zeros) and flatten time-major: chunk c covers rows
    # [c*tile_t*b_pad, (c+1)*tile_t*b_pad).
    x_p = jnp.zeros((seq, b_pad, f2), jnp.float32).at[:, :batch, :].set(x)
    x2 = x_p.reshape(seq * b_pad, f2)

    kernel = functools.partial(dendseq_kernel, tile_t=tile_t,
                               batch=batch, b_pad=b_pad)

    volts2, spk = pl.pallas_call(
        kernel,
        out_shape=(
            jax.ShapeDtypeStruct((seq * b_pad, n_pad), jnp.float32),
            jax.ShapeDtypeStruct((1, 1), jnp.float32),
        ),
        grid_spec=pltpu.PrefetchScalarGridSpec(
            num_scalar_prefetch=0,
            grid=(n_chunks,),
            in_specs=[
                pl.BlockSpec((tile_t * b_pad, f2), lambda c: (c, 0)),     # x chunk
                pl.BlockSpec(memory_space=pltpu.MemorySpace.VMEM),        # W_hidden (bf16)
                pl.BlockSpec(memory_space=pltpu.MemorySpace.VMEM),        # b_hidden
                pl.BlockSpec(memory_space=pltpu.MemorySpace.VMEM),        # W_out   (bf16)
                pl.BlockSpec(memory_space=pltpu.MemorySpace.VMEM),        # b_out
            ],
            out_specs=[
                pl.BlockSpec((tile_t * b_pad, n_pad), lambda c: (c, 0)),  # voltages chunk
                pl.BlockSpec((1, 1), lambda c: (0, 0)),                   # spk_act (resident)
            ],
            scratch_shapes=[
                pltpu.VMEM((b_pad, h_pad), jnp.float32),                  # v_hidden
                pltpu.VMEM((b_pad, h_pad), jnp.float32),                  # i_hidden
                pltpu.VMEM((b_pad, n_pad), jnp.float32),                  # v_out
                pltpu.VMEM((b_pad, n_pad), jnp.float32),                  # i_out
                pltpu.VMEM((tile_t * b_pad, h_pad), jnp.float32),         # hidden spikes
            ],
        ),
        compiler_params=pltpu.CompilerParams(
            dimension_semantics=("arbitrary",),        # sequential recurrence over time
            vmem_limit_bytes=32 * 1024 * 1024,         # safe on v5e/v6e/v7x
        ),
    )(x2, wh_p, bh_p, wo_p, bo_p)

    volts = volts2.reshape(seq, b_pad, n_pad)[:, :batch, :n_out]
    return volts, spk[0, 0]


def reference_forward(x, wh, bh, wo, bo):
    """Pure-JAX f32 reference with the identical (norse-style) step ordering."""
    seq, batch = x.shape[0], x.shape[1]
    x = x.reshape(seq, batch, -1)
    h1 = wh.shape[1]
    n_out = wo.shape[1]
    vh = jnp.zeros((batch, h1), jnp.float32)
    ih = jnp.zeros((batch, h1), jnp.float32)
    vo = jnp.zeros((batch, n_out), jnp.float32)
    io = jnp.zeros((batch, n_out), jnp.float32)
    volts = []
    spk = jnp.float32(0.0)
    for ts in range(seq):
        z_in = x[ts]
        spk = spk + jnp.sum(z_in)
        cur_h = z_in @ wh + bh
        v_dec = vh + DT * TAU_MEM_INV * ((V_LEAK - vh) + ih)
        i_dec = (1.0 - DT * TAU_SYN_INV) * ih
        z = (v_dec > V_TH).astype(jnp.float32)
        vh = v_dec * (1.0 - z)
        ih = i_dec + cur_h
        spk = spk + jnp.sum(z)
        cur_o = z @ wo + bo
        vo = vo + DT * TAU_MEM_INV * ((V_LEAK - vo) + io)
        io = (1.0 - DT * TAU_SYN_INV) * io + cur_o
        volts.append(vo)
    return jnp.stack(volts, axis=0), spk


def make_params(key, feature_size, h1, hchannels, ochannels, n_out=10):
    """Deterministic per-compartment Linear params, fused (concatenated) layouts."""
    f2 = feature_size * feature_size
    spl_1 = f2 // hchannels
    spl_2 = h1 // ochannels
    keys = jax.random.split(key, 2 * (hchannels + ochannels))
    ki = iter(keys)

    wh_parts, bh_sum = [], jnp.zeros((h1,), jnp.float32)
    for _ in range(hchannels):
        scale = 1.0 / jnp.sqrt(spl_1)
        wh_parts.append(jax.random.uniform(next(ki), (spl_1, h1),
                                           minval=-scale, maxval=scale))
        bh_sum = bh_sum + jax.random.uniform(next(ki), (h1,),
                                             minval=-scale, maxval=scale)
    wh = jnp.concatenate(wh_parts, axis=0).astype(jnp.float32)      # (F2, h1)
    bh = bh_sum.reshape(1, h1).astype(jnp.float32)

    wo_parts, bo_sum = [], jnp.zeros((n_out,), jnp.float32)
    for _ in range(ochannels):
        scale = 1.0 / jnp.sqrt(spl_2)
        wo_parts.append(jax.random.uniform(next(ki), (spl_2, n_out),
                                           minval=-scale, maxval=scale))
        bo_sum = bo_sum + jax.random.uniform(next(ki), (n_out,),
                                             minval=-scale, maxval=scale)
    wo = jnp.concatenate(wo_parts, axis=0).astype(jnp.float32)      # (h1, 10)
    bo = bo_sum.reshape(1, n_out).astype(jnp.float32)
    return wh, bh, wo, bo


if __name__ == "__main__":
    seq_length = 8
    batch_size = 2
    feature_size = 16            # F2 = 256
    h1 = 32
    hchannels = 2
    ochannels = 4
    tile_t = 4                   # 2 chunks -> exercises cross-chunk state carry

    key = jax.random.PRNGKey(0)
    k_x, k_p = jax.random.split(key)

    # x: [T, B, feature, feature] (each frame viewed as [B, F2] per timestep)
    x = jax.random.bernoulli(
        k_x, p=0.3, shape=(seq_length, batch_size, feature_size, feature_size)
    ).astype(jnp.float32)

    wh, bh, wo, bo = make_params(k_p, feature_size, h1, hchannels, ochannels)

    voltages, spk_act = dend_seq_net3(x, wh, bh, wo, bo, tile_t=tile_t)
    jax.block_until_ready((voltages, spk_act))

    assert voltages.shape == (seq_length, batch_size, 10)
    assert voltages.dtype == jnp.float32
    assert spk_act.shape == ()

    # Reference check with the SAME bf16-rounded weights (so the only delta is
    # f32 accumulation order on the MXU); activations are exact 0/1 in bf16.
    wh_r = wh.astype(jnp.bfloat16).astype(jnp.float32)
    wo_r = wo.astype(jnp.bfloat16).astype(jnp.float32)
    ref_volts, ref_spk = reference_forward(x, wh_r, bh, wo_r, bo)
    assert jnp.allclose(voltages, ref_volts, rtol=1e-3, atol=1e-4), \
        float(jnp.max(jnp.abs(voltages - ref_volts)))
    assert jnp.allclose(spk_act, ref_spk, atol=0.5), (float(spk_act), float(ref_spk))

    print("KERNEL_OK")
</pallas_src>

<mosaic_0001>
module attributes {stable_mosaic.version = 11 : i64} {
  func.func @dendseq_kernel(%arg0: i32, %arg1: memref<32x256xf32, #tpu.memory_space<vmem>>, %arg2: memref<256x128xbf16, #tpu.memory_space<vmem>>, %arg3: memref<1x128xf32, #tpu.memory_space<vmem>>, %arg4: memref<128x128xbf16, #tpu.memory_space<vmem>>, %arg5: memref<1x128xf32, #tpu.memory_space<vmem>>, %arg6: memref<32x128xf32, #tpu.memory_space<vmem>>, %arg7: memref<1x1xf32, #tpu.memory_space<vmem>>, %arg8: memref<8x128xf32, #tpu.memory_space<vmem>>, %arg9: memref<8x128xf32, #tpu.memory_space<vmem>>, %arg10: memref<8x128xf32, #tpu.memory_space<vmem>>, %arg11: memref<8x128xf32, #tpu.memory_space<vmem>>, %arg12: memref<32x128xf32, #tpu.memory_space<vmem>>) attributes {dimension_semantics = [#tpu.dimension_semantics<arbitrary>], iteration_bounds = array<i64: 2>, scalar_prefetch = 0 : i64, scratch_operands = 5 : i64, tpu.core_type = #tpu.core_type<tc>, window_params = [{transform_indices = @transform_0, window_bounds = array<i64: 32, 256>}, {pipeline_mode = #tpu.pipeline_mode<synchronous>, transform_indices = @transform_1, window_bounds = array<i64: 256, 128>}, {pipeline_mode = #tpu.pipeline_mode<synchronous>, transform_indices = @transform_2, window_bounds = array<i64: 1, 128>}, {pipeline_mode = #tpu.pipeline_mode<synchronous>, transform_indices = @transform_3, window_bounds = array<i64: 128, 128>}, {pipeline_mode = #tpu.pipeline_mode<synchronous>, transform_indices = @transform_4, window_bounds = array<i64: 1, 128>}, {transform_indices = @transform_5, window_bounds = array<i64: 32, 128>}, {pipeline_mode = #tpu.pipeline_mode<synchronous>, transform_indices = @transform_6, window_bounds = array<i64: 1, 1>}]} {
    %c0_i32 = arith.constant 0 : i32
    %0 = arith.cmpi eq, %arg0, %c0_i32 : i32
    %1 = arith.extui %0 : i1 to i32
    %c0_i32_0 = arith.constant 0 : i32
    %2 = arith.cmpi ne, %1, %c0_i32_0 : i32
    scf.if %2 {
      %cst_84 = arith.constant 0.000000e+00 : f32
      %177 = vector.broadcast %cst_84 : f32 to vector<8x128xf32>
      %c0_85 = arith.constant 0 : index
      %c0_86 = arith.constant 0 : index
      %178 = vector.load %arg8[%c0_85, %c0_86] : memref<8x128xf32, #tpu.memory_space<vmem>>, vector<8x128xf32>
      tpu.vector_store %arg8[%c0_85, %c0_86], %177 {strides = array<i32>} : memref<8x128xf32, #tpu.memory_space<vmem>>, vector<8x128xf32>,
      %cst_87 = arith.constant 0.000000e+00 : f32
      %179 = vector.broadcast %cst_87 : f32 to vector<8x128xf32>
      %c0_88 = arith.constant 0 : index
      %c0_89 = arith.constant 0 : index
      %180 = vector.load %arg9[%c0_88, %c0_89] : memref<8x128xf32, #tpu.memory_space<vmem>>, vector<8x128xf32>
      tpu.vector_store %arg9[%c0_88, %c0_89], %179 {strides = array<i32>} : memref<8x128xf32, #tpu.memory_space<vmem>>, vector<8x128xf32>,
      %cst_90 = arith.constant 0.000000e+00 : f32
      %181 = vector.broadcast %cst_90 : f32 to vector<8x128xf32>
      %c0_91 = arith.constant 0 : index
      %c0_92 = arith.constant 0 : index
      %182 = vector.load %arg10[%c0_91, %c0_92] : memref<8x128xf32, #tpu.memory_space<vmem>>, vector<8x128xf32>
      tpu.vector_store %arg10[%c0_91, %c0_92], %181 {strides = array<i32>} : memref<8x128xf32, #tpu.memory_space<vmem>>, vector<8x128xf32>,
      %cst_93 = arith.constant 0.000000e+00 : f32
      %183 = vector.broadcast %cst_93 : f32 to vector<8x128xf32>
      %c0_94 = arith.constant 0 : index
      %c0_95 = arith.constant 0 : index
      %184 = vector.load %arg11[%c0_94, %c0_95] : memref<8x128xf32, #tpu.memory_space<vmem>>, vector<8x128xf32>
      tpu.vector_store %arg11[%c0_94, %c0_95], %183 {strides = array<i32>} : memref<8x128xf32, #tpu.memory_space<vmem>>, vector<8x128xf32>,
      %cst_96 = arith.constant 0.000000e+00 : f32
      %185 = vector.broadcast %cst_96 : f32 to vector<1x1xf32>
      %c0_97 = arith.constant 0 : index
      %c0_98 = arith.constant 0 : index
      %186 = vector.load %arg7[%c0_97, %c0_98] : memref<1x1xf32, #tpu.memory_space<vmem>>, vector<1x1xf32>
      tpu.vector_store %arg7[%c0_97, %c0_98], %185 {strides = array<i32>} : memref<1x1xf32, #tpu.memory_space<vmem>>, vector<1x1xf32>,
    } else {
    }
    %c0 = arith.constant 0 : index
    %c0_1 = arith.constant 0 : index
    %3 = vector.load %arg1[%c0, %c0_1] : memref<32x256xf32, #tpu.memory_space<vmem>>, vector<32x256xf32>
    %4 = arith.truncf %3 : vector<32x256xf32> to vector<32x256xbf16>
    %c0_2 = arith.constant 0 : index
    %c0_3 = arith.constant 0 : index
    %5 = vector.load %arg2[%c0_2, %c0_3] : memref<256x128xbf16, #tpu.memory_space<vmem>>, vector<256x128xbf16>
    %cst = arith.constant dense<0.000000e+00> : vector<32x128xf32>
    %6 = tpu.matmul %4, %5, %cst {dimension_numbers = #tpu.dot_dimension_numbers<[1], [0], [0], [1], [0, 0, 1, 1], [], []>} : vector<32x256xbf16>, vector<256x128xbf16>, vector<32x128xf32> -> vector<32x128xf32>
    %c0_4 = arith.constant 0 : index
    %c0_5 = arith.constant 0 : index
    %7 = vector.load %arg3[%c0_4, %c0_5] : memref<1x128xf32, #tpu.memory_space<vmem>>, vector<1x128xf32>
    %8 = vector.broadcast %7 : vector<1x128xf32> to vector<32x128xf32>
    %9 = arith.addf %6, %8 : vector<32x128xf32>
    %10 = tpu.iota {dimensions = array<i32: 0>} : vector<32x1xi32>
    %c8_i32 = arith.constant 8 : i32
    %c0_i32_6 = arith.constant 0 : i32
    %11 = arith.cmpi eq, %c8_i32, %c0_i32_6 : i32
    %c1_i32 = arith.constant 1 : i32
    %12 = arith.select %11, %c1_i32, %c8_i32 : i32
    %13 = vector.broadcast %12 : i32 to vector<32x1xi32>
    %14 = arith.remsi %10, %13 : vector<32x1xi32>
    %c0_i32_7 = arith.constant 0 : i32
    %15 = vector.broadcast %c0_i32_7 : i32 to vector<32x1xi32>
    %16 = arith.cmpi ne, %14, %15 : vector<32x1xi32>
    %c0_i32_8 = arith.constant 0 : i32
    %17 = vector.broadcast %c0_i32_8 : i32 to vector<32x1xi32>
    %18 = arith.cmpi slt, %14, %17 : vector<32x1xi32>
    %c0_i32_9 = arith.constant 0 : i32
    %19 = arith.cmpi slt, %12, %c0_i32_9 : i32
    %20 = vector.broadcast %19 : i1 to vector<32x1xi1>
    %21 = vector.broadcast %20 : vector<32x1xi1> to vector<32x1xi1>
    %22 = arith.xori %18, %21 : vector<32x1xi1>
    %23 = arith.andi %22, %16 : vector<32x1xi1>
    %24 = vector.broadcast %12 : i32 to vector<32x1xi32>
    %25 = arith.addi %14, %24 : vector<32x1xi32>
    %26 = arith.select %23, %25, %14 : vector<32x1xi1>, vector<32x1xi32>
    %c2_i32 = arith.constant 2 : i32
    %27 = vector.broadcast %c2_i32 : i32 to vector<32x1xi32>
    %28 = arith.cmpi slt, %26, %27 : vector<32x1xi32>
    %29 = arith.extui %28 : vector<32x1xi1> to vector<32x1xi32>
    %30 = arith.sitofp %29 : vector<32x1xi32> to vector<32x1xf32>
    %31 = vector.broadcast %30 : vector<32x1xf32> to vector<32x128xf32>
    %32 = arith.mulf %9, %31 : vector<32x128xf32>
    %c0_10 = arith.constant 0 : index
    %c0_11 = arith.constant 0 : index
    %33 = vector.load %arg8[%c0_10, %c0_11] : memref<8x128xf32, #tpu.memory_space<vmem>>, vector<8x128xf32>
    %c0_12 = arith.constant 0 : index
    %c0_13 = arith.constant 0 : index
    %34 = vector.load %arg9[%c0_12, %c0_13] : memref<8x128xf32, #tpu.memory_space<vmem>>, vector<8x128xf32>
    %cst_14 = arith.constant 0.000000e+00 : f32
    %35 = vector.broadcast %cst_14 : f32 to vector<8x128xf32>
    %36 = arith.subf %35, %33 : vector<8x128xf32>
    %37 = arith.addf %36, %34 : vector<8x128xf32>
    %cst_15 = arith.constant 1.000000e-01 : f32
    %38 = vector.broadcast %cst_15 : f32 to vector<8x128xf32>
    %39 = arith.mulf %38, %37 : vector<8x128xf32>
    %40 = arith.addf %33, %39 : vector<8x128xf32>
    %cst_16 = arith.constant 8.000000e-01 : f32
    %41 = vector.broadcast %cst_16 : f32 to vector<8x128xf32>
    %42 = arith.mulf %41, %34 : vector<8x128xf32>
    %cst_17 = arith.constant 1.000000e+00 : f32
    %43 = vector.broadcast %cst_17 : f32 to vector<8x128xf32>
    %44 = arith.cmpf ogt, %40, %43 : vector<8x128xf32>
    %45 = arith.extui %44 : vector<8x128xi1> to vector<8x128xi32>
    %46 = arith.sitofp %45 : vector<8x128xi32> to vector<8x128xf32>
    %cst_18 = arith.constant 1.000000e+00 : f32
    %47 = vector.broadcast %cst_18 : f32 to vector<8x128xf32>
    %48 = arith.subf %47, %46 : vector<8x128xf32>
    %49 = arith.mulf %40, %48 : vector<8x128xf32>
    %50 = vector.extract_strided_slice %32 {offsets = [0, 0], sizes = [8, 128], strides = [1, 1]} : vector<32x128xf32> to vector<8x128xf32>
    %51 = arith.addf %42, %50 : vector<8x128xf32>
    %c0_19 = arith.constant 0 : index
    %c0_20 = arith.constant 0 : index
    %52 = vector.load %arg12[%c0_19, %c0_20] : memref<32x128xf32, #tpu.memory_space<vmem>>, vector<8x128xf32>
    tpu.vector_store %arg12[%c0_19, %c0_20], %46 {strides = array<i32>} : memref<32x128xf32, #tpu.memory_space<vmem>>, vector<8x128xf32>,
    %cst_21 = arith.constant 0.000000e+00 : f32
    %53 = vector.broadcast %cst_21 : f32 to vector<8x128xf32>
    %54 = arith.subf %53, %49 : vector<8x128xf32>
    %55 = arith.addf %54, %51 : vector<8x128xf32>
    %cst_22 = arith.constant 1.000000e-01 : f32
    %56 = vector.broadcast %cst_22 : f32 to vector<8x128xf32>
    %57 = arith.mulf %56, %55 : vector<8x128xf32>
    %58 = arith.addf %49, %57 : vector<8x128xf32>
    %cst_23 = arith.constant 8.000000e-01 : f32
    %59 = vector.broadcast %cst_23 : f32 to vector<8x128xf32>
    %60 = arith.mulf %59, %51 : vector<8x128xf32>
    %cst_24 = arith.constant 1.000000e+00 : f32
    %61 = vector.broadcast %cst_24 : f32 to vector<8x128xf32>
    %62 = arith.cmpf ogt, %58, %61 : vector<8x128xf32>
    %63 = arith.extui %62 : vector<8x128xi1> to vector<8x128xi32>
    %64 = arith.sitofp %63 : vector<8x128xi32> to vector<8x128xf32>
    %cst_25 = arith.constant 1.000000e+00 : f32
    %65 = vector.broadcast %cst_25 : f32 to vector<8x128xf32>
    %66 = arith.subf %65, %64 : vector<8x128xf32>
    %67 = arith.mulf %58, %66 : vector<8x128xf32>
    %68 = vector.extract_strided_slice %32 {offsets = [8, 0], sizes = [8, 128], strides = [1, 1]} : vector<32x128xf32> to vector<8x128xf32>
    %69 = arith.addf %60, %68 : vector<8x128xf32>
    %c8 = arith.constant 8 : index
    %c0_26 = arith.constant 0 : index
    %70 = vector.load %arg12[%c8, %c0_26] : memref<32x128xf32, #tpu.memory_space<vmem>>, vector<8x128xf32>
    tpu.vector_store %arg12[%c8, %c0_26], %64 {strides = array<i32>} : memref<32x128xf32, #tpu.memory_space<vmem>>, vector<8x128xf32>,
    %cst_27 = arith.constant 0.000000e+00 : f32
    %71 = vector.broadcast %cst_27 : f32 to vector<8x128xf32>
    %72 = arith.subf %71, %67 : vector<8x128xf32>
    %73 = arith.addf %72, %69 : vector<8x128xf32>
    %cst_28 = arith.constant 1.000000e-01 : f32
    %74 = vector.broadcast %cst_28 : f32 to vector<8x128xf32>
    %75 = arith.mulf %74, %73 : vector<8x128xf32>
    %76 = arith.addf %67, %75 : vector<8x128xf32>
    %cst_29 = arith.constant 8.000000e-01 : f32
    %77 = vector.broadcast %cst_29 : f32 to vector<8x128xf32>
    %78 = arith.mulf %77, %69 : vector<8x128xf32>
    %cst_30 = arith.constant 1.000000e+00 : f32
    %79 = vector.broadcast %cst_30 : f32 to vector<8x128xf32>
    %80 = arith.cmpf ogt, %76, %79 : vector<8x128xf32>
    %81 = arith.extui %80 : vector<8x128xi1> to vector<8x128xi32>
    %82 = arith.sitofp %81 : vector<8x128xi32> to vector<8x128xf32>
    %cst_31 = arith.constant 1.000000e+00 : f32
    %83 = vector.broadcast %cst_31 : f32 to vector<8x128xf32>
    %84 = arith.subf %83, %82 : vector<8x128xf32>
    %85 = arith.mulf %76, %84 : vector<8x128xf32>
    %86 = vector.extract_strided_slice %32 {offsets = [16, 0], sizes = [8, 128], strides = [1, 1]} : vector<32x128xf32> to vector<8x128xf32>
    %87 = arith.addf %78, %86 : vector<8x128xf32>
    %c16 = arith.constant 16 : index
    %c0_32 = arith.constant 0 : index
    %88 = vector.load %arg12[%c16, %c0_32] : memref<32x128xf32, #tpu.memory_space<vmem>>, vector<8x128xf32>
    tpu.vector_store %arg12[%c16, %c0_32], %82 {strides = array<i32>} : memref<32x128xf32, #tpu.memory_space<vmem>>, vector<8x128xf32>,
    %cst_33 = arith.constant 0.000000e+00 : f32
    %89 = vector.broadcast %cst_33 : f32 to vector<8x128xf32>
    %90 = arith.subf %89, %85 : vector<8x128xf32>
    %91 = arith.addf %90, %87 : vector<8x128xf32>
    %cst_34 = arith.constant 1.000000e-01 : f32
    %92 = vector.broadcast %cst_34 : f32 to vector<8x128xf32>
    %93 = arith.mulf %92, %91 : vector<8x128xf32>
    %94 = arith.addf %85, %93 : vector<8x128xf32>
    %cst_35 = arith.constant 8.000000e-01 : f32
    %95 = vector.broadcast %cst_35 : f32 to vector<8x128xf32>
    %96 = arith.mulf %95, %87 : vector<8x128xf32>
    %cst_36 = arith.constant 1.000000e+00 : f32
    %97 = vector.broadcast %cst_36 : f32 to vector<8x128xf32>
    %98 = arith.cmpf ogt, %94, %97 : vector<8x128xf32>
    %99 = arith.extui %98 : vector<8x128xi1> to vector<8x128xi32>
    %100 = arith.sitofp %99 : vector<8x128xi32> to vector<8x128xf32>
    %cst_37 = arith.constant 1.000000e+00 : f32
    %101 = vector.broadcast %cst_37 : f32 to vector<8x128xf32>
    %102 = arith.subf %101, %100 : vector<8x128xf32>
    %103 = arith.mulf %94, %102 : vector<8x128xf32>
    %104 = vector.extract_strided_slice %32 {offsets = [24, 0], sizes = [8, 128], strides = [1, 1]} : vector<32x128xf32> to vector<8x128xf32>
    %105 = arith.addf %96, %104 : vector<8x128xf32>
    %c24 = arith.constant 24 : index
    %c0_38 = arith.constant 0 : index
    %106 = vector.load %arg12[%c24, %c0_38] : memref<32x128xf32, #tpu.memory_space<vmem>>, vector<8x128xf32>
    tpu.vector_store %arg12[%c24, %c0_38], %100 {strides = array<i32>} : memref<32x128xf32, #tpu.memory_space<vmem>>, vector<8x128xf32>,
    %c0_39 = arith.constant 0 : index
    %c0_40 = arith.constant 0 : index
    %107 = vector.load %arg8[%c0_39, %c0_40] : memref<8x128xf32, #tpu.memory_space<vmem>>, vector<8x128xf32>
    tpu.vector_store %arg8[%c0_39, %c0_40], %103 {strides = array<i32>} : memref<8x128xf32, #tpu.memory_space<vmem>>, vector<8x128xf32>,
    %c0_41 = arith.constant 0 : index
    %c0_42 = arith.constant 0 : index
    %108 = vector.load %arg9[%c0_41, %c0_42] : memref<8x128xf32, #tpu.memory_space<vmem>>, vector<8x128xf32>
    tpu.vector_store %arg9[%c0_41, %c0_42], %105 {strides = array<i32>} : memref<8x128xf32, #tpu.memory_space<vmem>>, vector<8x128xf32>,
    %c0_43 = arith.constant 0 : index
    %c0_44 = arith.constant 0 : index
    %109 = vector.load %arg12[%c0_43, %c0_44] : memref<32x128xf32, #tpu.memory_space<vmem>>, vector<32x128xf32>
    %110 = arith.truncf %109 : vector<32x128xf32> to vector<32x128xbf16>
    %c0_45 = arith.constant 0 : index
    %c0_46 = arith.constant 0 : index
    %111 = vector.load %arg4[%c0_45, %c0_46] : memref<128x128xbf16, #tpu.memory_space<vmem>>, vector<128x128xbf16>
    %cst_47 = arith.constant dense<0.000000e+00> : vector<32x128xf32>
    %112 = tpu.matmul %110, %111, %cst_47 {dimension_numbers = #tpu.dot_dimension_numbers<[1], [0], [0], [1], [0, 0, 1, 1], [], []>} : vector<32x128xbf16>, vector<128x128xbf16>, vector<32x128xf32> -> vector<32x128xf32>
    %c0_48 = arith.constant 0 : index
    %c0_49 = arith.constant 0 : index
    %113 = vector.load %arg5[%c0_48, %c0_49] : memref<1x128xf32, #tpu.memory_space<vmem>>, vector<1x128xf32>
    %114 = vector.broadcast %113 : vector<1x128xf32> to vector<32x128xf32>
    %115 = arith.addf %112, %114 : vector<32x128xf32>
    %c0_50 = arith.constant 0 : index
    %c0_51 = arith.constant 0 : index
    %116 = vector.load %arg10[%c0_50, %c0_51] : memref<8x128xf32, #tpu.memory_space<vmem>>, vector<8x128xf32>
    %c0_52 = arith.constant 0 : index
    %c0_53 = arith.constant 0 : index
    %117 = vector.load %arg11[%c0_52, %c0_53] : memref<8x128xf32, #tpu.memory_space<vmem>>, vector<8x128xf32>
    %cst_54 = arith.constant 0.000000e+00 : f32
    %118 = vector.broadcast %cst_54 : f32 to vector<8x128xf32>
    %119 = arith.subf %118, %116 : vector<8x128xf32>
    %120 = arith.addf %119, %117 : vector<8x128xf32>
    %cst_55 = arith.constant 1.000000e-01 : f32
    %121 = vector.broadcast %cst_55 : f32 to vector<8x128xf32>
    %122 = arith.mulf %121, %120 : vector<8x128xf32>
    %123 = arith.addf %116, %122 : vector<8x128xf32>
    %cst_56 = arith.constant 8.000000e-01 : f32
    %124 = vector.broadcast %cst_56 : f32 to vector<8x128xf32>
    %125 = arith.mulf %124, %117 : vector<8x128xf32>
    %126 = vector.extract_strided_slice %115 {offsets = [0, 0], sizes = [8, 128], strides = [1, 1]} : vector<32x128xf32> to vector<8x128xf32>
    %127 = arith.addf %125, %126 : vector<8x128xf32>
    %c0_57 = arith.constant 0 : index
    %c0_58 = arith.constant 0 : index
    %128 = vector.load %arg6[%c0_57, %c0_58] : memref<32x128xf32, #tpu.memory_space<vmem>>, vector<8x128xf32>
    tpu.vector_store %arg6[%c0_57, %c0_58], %123 {strides = array<i32>} : memref<32x128xf32, #tpu.memory_space<vmem>>, vector<8x128xf32>,
    %cst_59 = arith.constant 0.000000e+00 : f32
    %129 = vector.broadcast %cst_59 : f32 to vector<8x128xf32>
    %130 = arith.subf %129, %123 : vector<8x128xf32>
    %131 = arith.addf %130, %127 : vector<8x128xf32>
    %cst_60 = arith.constant 1.000000e-01 : f32
    %132 = vector.broadcast %cst_60 : f32 to vector<8x128xf32>
    %133 = arith.mulf %132, %131 : vector<8x128xf32>
    %134 = arith.addf %123, %133 : vector<8x128xf32>
    %cst_61 = arith.constant 8.000000e-01 : f32
    %135 = vector.broadcast %cst_61 : f32 to vector<8x128xf32>
    %136 = arith.mulf %135, %127 : vector<8x128xf32>
    %137 = vector.extract_strided_slice %115 {offsets = [8, 0], sizes = [8, 128], strides = [1, 1]} : vector<32x128xf32> to vector<8x128xf32>
    %138 = arith.addf %136, %137 : vector<8x128xf32>
    %c8_62 = arith.constant 8 : index
    %c0_63 = arith.constant 0 : index
    %139 = vector.load %arg6[%c8_62, %c0_63] : memref<32x128xf32, #tpu.memory_space<vmem>>, vector<8x128xf32>
    tpu.vector_store %arg6[%c8_62, %c0_63], %134 {strides = array<i32>} : memref<32x128xf32, #tpu.memory_space<vmem>>, vector<8x128xf32>,
    %cst_64 = arith.constant 0.000000e+00 : f32
    %140 = vector.broadcast %cst_64 : f32 to vector<8x128xf32>
    %141 = arith.subf %140, %134 : vector<8x128xf32>
    %142 = arith.addf %141, %138 : vector<8x128xf32>
    %cst_65 = arith.constant 1.000000e-01 : f32
    %143 = vector.broadcast %cst_65 : f32 to vector<8x128xf32>
    %144 = arith.mulf %143, %142 : vector<8x128xf32>
    %145 = arith.addf %134, %144 : vector<8x128xf32>
    %cst_66 = arith.constant 8.000000e-01 : f32
    %146 = vector.broadcast %cst_66 : f32 to vector<8x128xf32>
    %147 = arith.mulf %146, %138 : vector<8x128xf32>
    %148 = vector.extract_strided_slice %115 {offsets = [16, 0], sizes = [8, 128], strides = [1, 1]} : vector<32x128xf32> to vector<8x128xf32>
    %149 = arith.addf %147, %148 : vector<8x128xf32>
    %c16_67 = arith.constant 16 : index
    %c0_68 = arith.constant 0 : index
    %150 = vector.load %arg6[%c16_67, %c0_68] : memref<32x128xf32, #tpu.memory_space<vmem>>, vector<8x128xf32>
    tpu.vector_store %arg6[%c16_67, %c0_68], %145 {strides = array<i32>} : memref<32x128xf32, #tpu.memory_space<vmem>>, vector<8x128xf32>,
    %cst_69 = arith.constant 0.000000e+00 : f32
    %151 = vector.broadcast %cst_69 : f32 to vector<8x128xf32>
    %152 = arith.subf %151, %145 : vector<8x128xf32>
    %153 = arith.addf %152, %149 : vector<8x128xf32>
    %cst_70 = arith.constant 1.000000e-01 : f32
    %154 = vector.broadcast %cst_70 : f32 to vector<8x128xf32>
    %155 = arith.mulf %154, %153 : vector<8x128xf32>
    %156 = arith.addf %145, %155 : vector<8x128xf32>
    %cst_71 = arith.constant 8.000000e-01 : f32
    %157 = vector.broadcast %cst_71 : f32 to vector<8x128xf32>
    %158 = arith.mulf %157, %149 : vector<8x128xf32>
    %159 = vector.extract_strided_slice %115 {offsets = [24, 0], sizes = [8, 128], strides = [1, 1]} : vector<32x128xf32> to vector<8x128xf32>
    %160 = arith.addf %158, %159 : vector<8x128xf32>
    %c24_72 = arith.constant 24 : index
    %c0_73 = arith.constant 0 : index
    %161 = vector.load %arg6[%c24_72, %c0_73] : memref<32x128xf32, #tpu.memory_space<vmem>>, vector<8x128xf32>
    tpu.vector_store %arg6[%c24_72, %c0_73], %156 {strides = array<i32>} : memref<32x128xf32, #tpu.memory_space<vmem>>, vector<8x128xf32>,
    %c0_74 = arith.constant 0 : index
    %c0_75 = arith.constant 0 : index
    %162 = vector.load %arg10[%c0_74, %c0_75] : memref<8x128xf32, #tpu.memory_space<vmem>>, vector<8x128xf32>
    tpu.vector_store %arg10[%c0_74, %c0_75], %156 {strides = array<i32>} : memref<8x128xf32, #tpu.memory_space<vmem>>, vector<8x128xf32>,
    %c0_76 = arith.constant 0 : index
    %c0_77 = arith.constant 0 : index
    %163 = vector.load %arg11[%c0_76, %c0_77] : memref<8x128xf32, #tpu.memory_space<vmem>>, vector<8x128xf32>
    tpu.vector_store %arg11[%c0_76, %c0_77], %160 {strides = array<i32>} : memref<8x128xf32, #tpu.memory_space<vmem>>, vector<8x128xf32>,
    %c0_78 = arith.constant 0 : index
    %c0_79 = arith.constant 0 : index
    %164 = vector.load %arg7[%c0_78, %c0_79] : memref<1x1xf32, #tpu.memory_space<vmem>>, vector<1x1xf32>
    %165 = vector.shape_cast %3 : vector<32x256xf32> to vector<1x32x256xf32>
    %cst_80 = arith.constant dense<0.000000e+00> : vector<1xf32>
    %166 = vector.multi_reduction <add>, %165, %cst_80 [1, 2] : vector<1x32x256xf32> to vector<1xf32>
    %167 = vector.shape_cast %166 : vector<1xf32> to vector<1x1x1xf32>
    %168 = vector.extract %167[0, 0, 0] : f32 from vector<1x1x1xf32>
    %169 = vector.shape_cast %109 : vector<32x128xf32> to vector<1x32x128xf32>
    %cst_81 = arith.constant dense<0.000000e+00> : vector<1xf32>
    %170 = vector.multi_reduction <add>, %169, %cst_81 [1, 2] : vector<1x32x128xf32> to vector<1xf32>
    %171 = vector.shape_cast %170 : vector<1xf32> to vector<1x1x1xf32>
    %172 = vector.extract %171[0, 0, 0] : f32 from vector<1x1x1xf32>
    %173 = arith.addf %168, %172 : f32
    %174 = vector.broadcast %173 : f32 to vector<1x1xf32>
    %175 = arith.addf %164, %174 : vector<1x1xf32>
    %c0_82 = arith.constant 0 : index
    %c0_83 = arith.constant 0 : index
    %176 = vector.load %arg7[%c0_82, %c0_83] : memref<1x1xf32, #tpu.memory_space<vmem>>, vector<1x1xf32>
    tpu.vector_store %arg7[%c0_82, %c0_83], %175 {strides = array<i32>} : memref<1x1xf32, #tpu.memory_space<vmem>>, vector<1x1xf32>,
    return
  }
  func.func @transform_0(%arg0: i32) -> (i32, i32) {
    %c0_i32 = arith.constant 0 : i32
    %c0_i32_0 = arith.constant 0 : i32
    return %arg0, %c0_i32 : i32, i32
  }
  func.func @transform_1(%arg0: i32) -> (i32, i32) {
    %c0_i32 = arith.constant 0 : i32
    %c0_i32_0 = arith.constant 0 : i32
    %c0_i32_1 = arith.constant 0 : i32
    return %c0_i32, %c0_i32_0 : i32, i32
  }
  func.func @transform_2(%arg0: i32) -> (i32, i32) {
    %c0_i32 = arith.constant 0 : i32
    %c0_i32_0 = arith.constant 0 : i32
    %c0_i32_1 = arith.constant 0 : i32
    return %c0_i32, %c0_i32_0 : i32, i32
  }
  func.func @transform_3(%arg0: i32) -> (i32, i32) {
    %c0_i32 = arith.constant 0 : i32
    %c0_i32_0 = arith.constant 0 : i32
    %c0_i32_1 = arith.constant 0 : i32
    return %c0_i32, %c0_i32_0 : i32, i32
  }
  func.func @transform_4(%arg0: i32) -> (i32, i32) {
    %c0_i32 = arith.constant 0 : i32
    %c0_i32_0 = arith.constant 0 : i32
    %c0_i32_1 = arith.constant 0 : i32
    return %c0_i32, %c0_i32_0 : i32, i32
  }
  func.func @transform_5(%arg0: i32) -> (i32, i32) {
    %c0_i32 = arith.constant 0 : i32
    %c0_i32_0 = arith.constant 0 : i32
    return %arg0, %c0_i32 : i32, i32
  }
  func.func @transform_6(%arg0: i32) -> (i32, i32) {
    %c0_i32 = arith.constant 0 : i32
    %c0_i32_0 = arith.constant 0 : i32
    %c0_i32_1 = arith.constant 0 : i32
    return %c0_i32, %c0_i32_0 : i32, i32
  }
}

</mosaic_0001>

<bundles_post_ra>
// kernel: dend_seq_net3.1
= control target key start
LH: loop header
LB: loop body
LE: loop exit
PB: predicated region body
PF: predicated region fallthrough
CT: control target
= control target key end

     0   :  { %12 = vsyncpa [#allocation8], 0  ;;  %s1070_s21 = smov 0   ;;  %s1203_s0 = inlined_call_operand.vmem [shape: f32[64,256], index: 0, kind: input, shape index: {}]   ;;  %s1204_s1 = inlined_call_operand.vmem [shape: bf16[256,128], index: 1, kind: input, shape index: {}]   ;;  %s1205_s2 = inlined_call_operand.vmem [shape: f32[1,128], index: 2, kind: input, shape index: {}]   ;;  %s1206_s3 = inlined_call_operand.vmem [shape: bf16[128,128], index: 3, kind: input, shape index: {}]   ;;  %s1207_s4 = inlined_call_operand.vmem [shape: f32[1,128], index: 4, kind: input, shape index: {}]   ;;  %s1208_s5 = inlined_call_operand.vmem [shape: f32[64,128], index: 5, kind: output, shape index: {0}]   ;;  %s1209_s6 = inlined_call_operand.hbm [shape: f32[1,1], index: 6, kind: output, shape index: {1}]  }
   0x1 LB: > { %s1076_s22 = sadd.s32 4294967295, %s1029_s21   ;;  %p815_p0 = scmp.ge.s32.totalorder %s1029_s21, 1  ;;  %s1029_s21 = sphi %s1070_s21, %s18_s21  }
   0x2   : > { %p213_p1 = scmp.lt.s32.totalorder %s1029_s21, 3 }
   0x4   : > { %p214_p2 = pnand %p815_p0, %p213_p1 }
   0x5   : > { %s816_s23 = sshll.u32 (!%p214_p2), %s1076_s22, 2  ;;  %p821_p4 = scmp.ne.s32.totalorder (!%p214_p2), %s1076_s22, 0 }
   0x6   : > { %217 = sbr.rel (%p214_p2) target bundleno = 413 (0x19d), region = 40  ;;  %p245_p3 = scmp.lt.s32.totalorder (!%p214_p2), %s816_s23, 7 }
   0xb   : > { %s1211_s23 = smov (!%p245_p3, %s816_s23), 7  ;;  %260 = sbr.rel (%p821_p4) target bundleno = 22 (0x16), region = 44 }
   0xc   : > { %s930_s24 = sshll.u32 %s1211_s23, 4  ;;  %s820_s25 = sshll.u32 %s1211_s23, 3 }
   0xd   : > { %s1084_s28 = scalar_lea.vmem %s1203_s0, %s930_s24  ;;  %s1089_s7 = scalar_lea.vmem %s1208_s5, %s820_s25 }
  0x10   : > { %v1031_v0 = vmov 0.0   ;;  %vm265_vm0 = vcmask 0  }
  0x11   : > { %261 = vst [vmem:[#allocation2] sm:$0xff] %v1031_v0 }
  0x12   : > { %262 = vst [vmem:[#allocation3] sm:$0xff] %v1031_v0 }
  0x13   : > { %263 = vst [vmem:[#allocation4] sm:$0xff] %v1031_v0 }
  0x14   : > { %264 = vst [vmem:[#allocation5] sm:$0xff] %v1031_v0 }
  0x15   : > { %266 = vst.msk [vmem:[#allocation7] sm:$0x1] %vm265_vm0, %v1031_v0 }
  0x16 PF: > { %v938_v1 = vld [vmem:[%s1204_s1 + $0x38] sm:$0xff]  ;;  %v937_v3 = vld [vmem:[%s1204_s1 + $0x30] sm:$0xff]  ;;  %v936_v5 = vld [vmem:[%s1204_s1 + $0x28] sm:$0xff]  ;;  %v449_v47 = vlaneseq  ;;  %v1032_v50 = vmov 0.0   ;;  %s1034_s23 = smov [#allocation7]   ;;  %s746_s29 = sshll.u32 %s1209_s6, 4  ;;  %s747_s29 = int_to_ptr.hbm [resolvable:$true] %s746_s29 }
  0x17   : > { %v946_v2 = vld [vmem:[%s1204_s1 + $0x78] sm:$0xff]  ;;  %411 = vmatpush.bf16.msra.mxu0 %v938_v1  ;;  %v945_v4 = vld [vmem:[%s1204_s1 + $0x70] sm:$0xff]  ;;  %959 = vmatpush.bf16.msra.mxu3 %v938_v1  ;;  %v944_v6 = vld [vmem:[%s1204_s1 + $0x68] sm:$0xff]  ;;  %s744_s24 = sshll.u32 %s1034_s23, 4  ;;  %vm727_vm11 = vcmask 0   ;;  %p975_p5 = scmp.eq.s32.totalorder %s1076_s22, 1  ;;  %s745_s24 = int_to_ptr.vmem [resolvable:$true] %s744_s24 }
  0x18   : > { %430 = vmatpush.bf16.msra.mxu1 %v946_v2  ;;  %v267_v7 = vld [vmem:[%s1084_s28] sm:$0xff]  ;;  %v268_v8 = vld [vmem:[%s1084_s28 + $0x8] sm:$0xff]  ;;  %v269_v10 = vld [vmem:[%s1084_s28 + $0x10] sm:$0xff]  ;;  %v450_v49 = vshrl.u32 %v449_v47, 7 }
  0x19   : > { %v696_v9 = vadd.f32 %v268_v8, %v267_v7  ;;  %v935_v12 = vld [vmem:[%s1204_s1 + $0x20] sm:$0xff]  ;;  %v270_v14 = vld [vmem:[%s1084_s28 + $0x18] sm:$0xff]  ;;  %v272_v20 = vld [vmem:[%s1084_s28 + $0x28] sm:$0xff]  ;;  %v275_v33 = vpack.c.bf16 %v269_v10, %v267_v7 }
  0x1a   : > { %v943_v13 = vld [vmem:[%s1204_s1 + $0x60] sm:$0xff]  ;;  %v934_v18 = vld [vmem:[%s1204_s1 + $0x18] sm:$0xff]  ;;  %v933_v23 = vld [vmem:[%s1204_s1 + $0x10] sm:$0xff]  ;;  %v276_v34 = vpack.c.bf16 %v270_v14, %v268_v8  ;;  %v458_v52 = vand.u32 7, %v450_v49  ;;  %v451_v56 = vadd.s32 8, %v450_v49  ;;  %v452_v2 = vadd.s32 16, %v450_v49 }
  0x1b   : > { %412 = vmatpush.bf16.msra.mxu0 %v937_v3  ;;  %960 = vmatpush.bf16.msra.mxu3 %v937_v3  ;;  %v697_v11 = vadd.f32 %v696_v9, %v269_v10  ;;  %v271_v16 = vld [vmem:[%s1084_s28 + $0x20] sm:$0xff]  ;;  %v942_v19 = vld [vmem:[%s1204_s1 + $0x58] sm:$0xff]  ;;  %v941_v24 = vld [vmem:[%s1204_s1 + $0x50] sm:$0xff] }
  0x1c   : > { %431 = vmatpush.bf16.msra.mxu1 %v945_v4  ;;  %v954_v22 = vld [vmem:[%s1206_s3 + $0x38] sm:$0xff]  ;;  %v953_v25 = vld [vmem:[%s1206_s3 + $0x30] sm:$0xff]  ;;  %v932_v26 = vld [vmem:[%s1204_s1 + $0x8] sm:$0xff]  ;;  %vm502_vm2 = vcmp.lt.s32.totalorder %v458_v52, 2  ;;  %v465_v1 = vand.u32 7, %v451_v56  ;;  %v472_v9 = vand.u32 7, %v452_v2 }
  0x1d   : > { %v698_v15 = vadd.f32 %v697_v11, %v270_v14  ;;  %644 = vmatpush.bf16.msra.mxu2 %v954_v22  ;;  %v940_v27 = vld [vmem:[%s1204_s1 + $0x48] sm:$0xff]  ;;  %v931_v29 = vld [vmem:[%s1204_s1] sm:$0xff]  ;;  %v273_v31 = vld [vmem:[%s1084_s28 + $0x30] sm:$0xff]  ;;  %v886_v62 = vsel %vm502_vm2, 1.0, %v1032_v50 }
  0x1e   : > { %v952_v28 = vld [vmem:[%s1206_s3 + $0x28] sm:$0xff]  ;;  %v939_v30 = vld [vmem:[%s1204_s1 + $0x40] sm:$0xff]  ;;  %v277_v35 = vpack.c.bf16 %v273_v31, %v271_v16  ;;  %v274_v36 = vld [vmem:[%s1084_s28 + $0x38] sm:$0xff]  ;;  %vm503_vm3 = vcmp.lt.s32.totalorder %v465_v1, 2  ;;  %vm504_vm4 = vcmp.lt.s32.totalorder %v472_v9, 2 }
  0x1f   : > { %413 = vmatpush.bf16.msra.mxu0 %v936_v5  ;;  %961 = vmatpush.bf16.msra.mxu3 %v936_v5  ;;  %v699_v17 = vadd.f32 %v698_v15, %v271_v16  ;;  %v951_v32 = vld [vmem:[%s1206_s3 + $0x20] sm:$0xff]  ;;  %v278_v37 = vpack.c.bf16 %v274_v36, %v272_v20  ;;  %v950_v38 = vld [vmem:[%s1206_s3 + $0x18] sm:$0xff]  ;;  %v949_v39 = vld [vmem:[%s1206_s3 + $0x10] sm:$0xff] }
  0x20   : > { %432 = vmatpush.bf16.msra.mxu1 %v944_v6  ;;  %v518_v40 = vld [vmem:[#allocation2] sm:$0xff]  ;;  %v519_v42 = vld [vmem:[#allocation3] sm:$0xff] }
  0x21   : > { %v700_v21 = vadd.f32 %v699_v17, %v272_v20  ;;  %645 = vmatpush.bf16.msra.mxu2 %v953_v25  ;;  %v520_v41 = vsub.f32 0.0, %v518_v40  ;;  %v948_v43 = vld [vmem:[%s1206_s3 + $0x8] sm:$0xff]  ;;  %v947_v45 = vld [vmem:[%s1206_s3] sm:$0xff]  ;;  %v524_v0 = vmul.f32 0.8, %v519_v42 }
  0x22   : > { %v989_v53 = vld [vmem:[%s1205_s2] ss:$0 sm:$0xff] }
  0x23   : > { %414 = vmatpush.bf16.msra.mxu0 %v935_v12  ;;  %962 = vmatpush.bf16.msra.mxu3 %v935_v12  ;;  %v521_v44 = vadd.f32 %v520_v41, %v519_v42  ;;  %v701_v55 = vadd.f32 %v700_v21, %v273_v31  ;;  %v887_v12 = vsel %vm503_vm3, 1.0, %v1032_v50  ;;  %v888_v21 = vsel %vm504_vm4, 1.0, %v1032_v50 }
  0x24   : > { %433 = vmatpush.bf16.msra.mxu1 %v943_v13 }
  0x25   : > { %646 = vmatpush.bf16.msra.mxu2 %v952_v28  ;;  %v522_v46 = vmul.f32 0.1, %v521_v44  ;;  %v702_v57 = vadd.f32 %v701_v55, %v274_v36 }
  0x27   : > { %415 = vmatpush.bf16.msra.mxu0 %v934_v18  ;;  %963 = vmatpush.bf16.msra.mxu3 %v934_v18  ;;  %v523_v48 = vadd.f32 %v522_v46, %v518_v40  ;;  %v453_v18 = vadd.s32 24, %v450_v49 }
  0x28   : > { %434 = vmatpush.bf16.msra.mxu1 %v942_v19  ;;  %703 = vadd.xlane.f32.xlu0 %v702_v57 }
  0x29   : > { %647 = vmatpush.bf16.msra.mxu2 %v951_v32  ;;  %vm525_vm1 = vcmp.gt.f32.partialorder %v523_v48, 1.0 }
  0x2a   : > { %v1174_v51 = vsel %vm525_vm1, 1.0, %v1032_v50 }
  0x2b   : > { %416 = vmatpush.bf16.msra.mxu0 %v933_v23  ;;  %964 = vmatpush.bf16.msra.mxu3 %v933_v23  ;;  %v528_v54 = vsub.f32 1.0, %v1174_v51 }
  0x2c   : > { %435 = vmatpush.bf16.msra.mxu1 %v941_v24 }
  0x2d   : > { %648 = vmatpush.bf16.msra.mxu2 %v950_v38  ;;  %v529_v61 = vmul.f32 %v528_v54, %v523_v48 }
  0x2f   : > { %417 = vmatpush.bf16.msra.mxu0 %v932_v26  ;;  %965 = vmatpush.bf16.msra.mxu3 %v932_v26  ;;  %v532_v4 = vsub.f32 0.0, %v529_v61  ;;  %v1033_v26 = vmov 1.0|1.0  }
  0x30   : > { %436 = vmatpush.bf16.msra.mxu1 %v940_v27  ;;  %v479_v27 = vand.u32 7, %v453_v18 }
  0x31   : > { %649 = vmatpush.bf16.msra.mxu2 %v949_v39 }
  0x32   : > { %vm505_vm7 = vcmp.lt.s32.totalorder %v479_v27, 2 }
  0x33   : > { %418 = vmatpush.bf16.msra.mxu0 %v931_v29  ;;  %966 = vmatpush.bf16.msra.mxu3 %v931_v29 }
  0x34   : > { %437 = vmatpush.bf16.msra.mxu1 %v939_v30 }
  0x35   : > { %650 = vmatpush.bf16.msra.mxu2 %v948_v43 }
  0x36   : > { %419 = vmatmul.bf16.vlgmr.msra.gmra.mxu0 %v275_v33  ;;  %424 = vmatmul.bf16.vlgmr.msra.gmra.mxu3 %v277_v35 }
  0x37   : > { %438 = vmatmul.bf16.vlgmr.msra.gmra.mxu1 %v276_v34 }
  0x39   : > { %651 = vmatpush.bf16.msra.mxu2 %v947_v45 }
  0x47   : > { %443 = vmatmul.bf16.gmra.mxu1 %v278_v37  ;;  %v889_v37 = vsel %vm505_vm7, 1.0, %v1032_v50 }
  0xb3   : > { %v420_v58 = vpop.f32.mrf.mxu0 }
  0xb4   : > { %v439_v59 = vpop.f32.mrf.mxu1  ;;  %v421_v60 = vadd.f32 %v989_v53, %v420_v58 }
  0xb6   : > { %v440_v63 = vadd.f32 %v439_v59, %v421_v60  ;;  %v663_v59 = vld [vmem:[#allocation4] sm:$0xff] }
  0xb7   : > { %v665_v60 = vsub.f32 0.0, %v663_v59 }
  0xb8   : > { %v514_v3 = vmul.f32 %v886_v62, %v440_v63 }
  0xb9   : > { %v425_v6 = vpop.f32.mrf.mxu3 }
  0xba   : > { %v530_v5 = vadd.f32 %v524_v0, %v514_v3  ;;  %v426_v16 = vadd.f32 %v989_v53, %v425_v6  ;;  %v704_v0 = vpop.xlane.xlu0 %703  ;;  %v990_v6 = vld [vmem:[%s1207_s4] ss:$0 sm:$0xff] }
  0xbb   : > { %v422_v7 = vpop.f32.mrf.mxu0 }
  0xbc   : > { %v441_v8 = vpop.f32.mrf.mxu1  ;;  %v423_v10 = vadd.f32 %v989_v53, %v422_v7  ;;  %v533_v11 = vadd.f32 %v532_v4, %v530_v5  ;;  %v536_v19 = vmul.f32 0.8, %v530_v5 }
  0xbe   : > { %v442_v13 = vadd.f32 %v441_v8, %v423_v10  ;;  %v534_v14 = vmul.f32 0.1, %v533_v11 }
  0xc0   : > { %v515_v15 = vmul.f32 %v887_v12, %v442_v13  ;;  %v535_v17 = vadd.f32 %v534_v14, %v529_v61  ;;  %v664_v61 = vld [vmem:[#allocation5] sm:$0xff] }
  0xc1   : > { %v427_v28 = vpop.f32.mrf.mxu3  ;;  %v666_v62 = vadd.f32 %v665_v60, %v664_v61  ;;  %v669_v7 = vmul.f32 0.8, %v664_v61 }
  0xc2   : > { %vm537_vm5 = vcmp.gt.f32.partialorder %v535_v17, 1.0  ;;  %v542_v23 = vadd.f32 %v536_v19, %v515_v15  ;;  %v428_v32 = vadd.f32 %v989_v53, %v427_v28 }
  0xc3   : > { %v891_v22 = vsel %vm537_vm5, 1.0, %v1032_v50  ;;  %vm955_vm6 = vmpackc.low %vm537_vm5, %vm525_vm1  ;;  %v667_v63 = vmul.f32 0.1, %v666_v62 }
  0xc4   : > { %v444_v20 = vpop.f32.mrf.mxu1  ;;  %v540_v25 = vsub.f32 1.0, %v891_v22  ;;  %956 = vmatmul.msk.bf16.vlgmr.msra.gmra.mxu2 %vm955_vm6, %v1033_v26  ;;  %v548_v31 = vmul.f32 0.8, %v542_v23  ;;  %v712_v52 = vadd.f32 %v891_v22, %v1174_v51  ;;  %v705_v51 = vrot.slane %v704_v0, 4 }
  0xc5   : > { %v445_v24 = vadd.f32 %v444_v20, %v426_v16  ;;  %v668_v1 = vadd.f32 %v667_v63, %v663_v59 }
  0xc6   : > { %v541_v30 = vmul.f32 %v540_v25, %v535_v17  ;;  %v706_v2 = vadd.f32 %v705_v51, %v704_v0 }
  0xc7   : > { %v516_v29 = vmul.f32 %v888_v21, %v445_v24  ;;  %671 = vst [vmem:[%s1089_s7] sm:$0xff] %v668_v1  ;;  %v672_v10 = vsub.f32 0.0, %v668_v1 }
  0xc8   : > { %v544_v33 = vsub.f32 0.0, %v541_v30  ;;  %v707_v3 = vrot.slane %v706_v2, 2 }
  0xc9   : > { %v554_v34 = vadd.f32 %v548_v31, %v516_v29 }
  0xca   : > { %v545_v35 = vadd.f32 %v544_v33, %v542_v23  ;;  %v708_v4 = vadd.f32 %v707_v3, %v706_v2 }
  0xcb   : > { %v560_v41 = vmul.f32 0.8, %v554_v34 }
  0xcc   : > { %v446_v36 = vpop.f32.mrf.mxu1  ;;  %v546_v39 = vmul.f32 0.1, %v545_v35 }
  0xcd   : > { %v447_v38 = vadd.f32 %v446_v36, %v428_v32 }
  0xce   : > { %v547_v42 = vadd.f32 %v546_v39, %v541_v30 }
  0xcf   : > { %v517_v40 = vmul.f32 %v889_v37, %v447_v38 }
  0xd0   : > { %vm549_vm8 = vcmp.gt.f32.partialorder %v547_v42, 1.0 }
  0xd1   : > { %v566_v43 = vadd.f32 %v560_v41, %v517_v40  ;;  %v892_v44 = vsel %vm549_vm8, 1.0, %v1032_v50 }
  0xd2   : > { %v552_v45 = vsub.f32 1.0, %v892_v44  ;;  %v713_v54 = vadd.f32 %v892_v44, %v712_v52 }
  0xd3   : > { %569 = vst [vmem:[#allocation3] sm:$0xff] %v566_v43 }
  0xd4   : > { %v553_v46 = vmul.f32 %v552_v45, %v547_v42  ;;  %v695_v42 = vld [vmem:[#allocation7] sm:$0x1] }
  0xd6   : > { %v556_v47 = vsub.f32 0.0, %v553_v46 }
  0xd8   : > { %v557_v48 = vadd.f32 %v556_v47, %v554_v34 }
  0xda   : > { %v558_v49 = vmul.f32 0.1, %v557_v48 }
  0xdc   : > { %v559_v53 = vadd.f32 %v558_v49, %v553_v46 }
  0xde   : > { %vm561_vm9 = vcmp.gt.f32.partialorder %v559_v53, 1.0 }
  0xdf   : > { %vm957_vm10 = vmpackc.low %vm561_vm9, %vm549_vm8  ;;  %v893_v55 = vsel %vm561_vm9, 1.0, %v1032_v50  ;;  %v709_v50 = vrot.slane %v708_v4, 1 }
  0xe0   : > { %958 = vmatmul.msk.bf16.gmra.mxu2 %vm957_vm10, %v1033_v26  ;;  %v714_v56 = vadd.f32 %v893_v55, %v713_v54  ;;  %v564_v57 = vsub.f32 1.0, %v893_v55 }
  0xe1   : > { %v710_v5 = vadd.f32 %v709_v50, %v708_v4 }
  0xe2   : > { %715 = vadd.xlane.f32.xlu0 %v714_v56  ;;  %v565_v58 = vmul.f32 %v564_v57, %v559_v53 }
  0xe3   : > { %967 = vpush %v710_v5 }
  0xe4   : > { %568 = vst [vmem:[#allocation2] sm:$0xff] %v565_v58 }
 0x114   : > { %s968_s19 = spop %967 }
 0x147   : > { %v653_v8 = vpop.f32.mrf.mxu2 }
 0x148   : > { %v654_v9 = vadd.f32 %v990_v6, %v653_v8 }
 0x14a   : > { %v670_v11 = vadd.f32 %v669_v7, %v654_v9 }
 0x14c   : > { %v673_v12 = vadd.f32 %v672_v10, %v670_v11  ;;  %v676_v17 = vmul.f32 0.8, %v670_v11 }
 0x14e   : > { %v674_v13 = vmul.f32 0.1, %v673_v12 }
 0x14f   : > { %v655_v14 = vpop.f32.mrf.mxu2 }
 0x150   : > { %v675_v15 = vadd.f32 %v674_v13, %v668_v1  ;;  %v656_v16 = vadd.f32 %v990_v6, %v655_v14 }
 0x152   : > { %v677_v18 = vadd.f32 %v676_v17, %v656_v16  ;;  %v679_v19 = vsub.f32 0.0, %v675_v15  ;;  %678 = vst [vmem:[%s1089_s7 + $0x8] sm:$0xff] %v675_v15 }
 0x154   : > { %v680_v20 = vadd.f32 %v679_v19, %v677_v18  ;;  %v683_v32 = vmul.f32 0.8, %v677_v18 }
 0x155   : > { %v716_v21 = vpop.xlane.xlu0 %715 }
 0x156   : > { %v681_v22 = vmul.f32 0.1, %v680_v20  ;;  %v717_v23 = vrot.slane %v716_v21, 4 }
 0x158   : > { %v682_v24 = vadd.f32 %v681_v22, %v675_v15  ;;  %v718_v25 = vadd.f32 %v717_v23, %v716_v21 }
 0x15a   : > { %685 = vst [vmem:[%s1089_s7 + $0x10] sm:$0xff] %v682_v24  ;;  %v719_v26 = vrot.slane %v718_v25, 2  ;;  %v686_v34 = vsub.f32 0.0, %v682_v24 }
 0x15c   : > { %v720_v27 = vadd.f32 %v719_v26, %v718_v25 }
 0x15e   : > { %v721_v28 = vrot.slane %v720_v27, 1 }
 0x160   : > { %v722_v29 = vadd.f32 %v721_v28, %v720_v27 }
 0x162   : > { %969 = vpush %v722_v29 }
 0x163   : > { %v658_v30 = vpop.f32.mrf.mxu2 }
 0x164   : > { %v659_v31 = vadd.f32 %v990_v6, %v658_v30 }
 0x166   : > { %v684_v33 = vadd.f32 %v683_v32, %v659_v31 }
 0x168   : > { %v687_v35 = vadd.f32 %v686_v34, %v684_v33  ;;  %v690_v40 = vmul.f32 0.8, %v684_v33 }
 0x16a   : > { %v688_v36 = vmul.f32 0.1, %v687_v35 }
 0x16b   : > { %v660_v37 = vpop.f32.mrf.mxu2 }
 0x16c   : > { %v689_v38 = vadd.f32 %v688_v36, %v682_v24  ;;  %v661_v39 = vadd.f32 %v990_v6, %v660_v37 }
 0x16e   : > { %692 = vst [vmem:[%s1089_s7 + $0x18] sm:$0xff] %v689_v38  ;;  %v691_v41 = vadd.f32 %v690_v40, %v661_v39 }
 0x16f   : > { %693 = vst [vmem:[#allocation4] sm:$0xff] %v689_v38 }
 0x170   : > { %694 = vst [vmem:[#allocation5] sm:$0xff] %v691_v41 }
 0x193   : > { %s970_s20 = spop %969 }
 0x194   : > { %s724_s25 = sadd.f32 %s970_s20, %s968_s19 }
 0x196   : > { %v725_v43 = vstv %s724_s25 }
 0x197   : > { %v726_v44 = vadd.f32 %v725_v43, %v695_v42 }
 0x199   : > { %728 = vst.msk [vmem:[#allocation7] sm:$0x1] %vm727_vm11, %v726_v44 }
 0x19a   : > { %972 = dma.vmem_to_hbm [thread:$0]  (%p975_p5), %s745_s24, 16, %s747_s29, [#allocation8]  }
 0x19b   : > { %1024 = dma.done.wait (%p975_p5), [#allocation8], 16  }
 0x19c   : > { %1026 = vsyncadd (%p975_p5), [#allocation8], 4294967280 }
 0x19d PF: > { %s18_s21 = sadd.s32 1, %s1029_s21  }
 0x19e   : > { %p15_p6 = scmp.ge.s32.totalorder %s18_s21, 4  }
 0x1a0   :  { %17 = sbr.rel (!%p15_p6) target bundleno = 1 (0x1), region = 83 }
 0x1a5   :  { %768 = vsyncpa [#allocation8], 1 }
 0x1a6   :  { %770 = vsyncpa [#allocation8 + $0x1], 1 }

</bundles_post_ra>
